<compile_context>
chip_gen: v5e
topology: v5e:2x2
jax: 0.10.0
libtpu: 0.0.40
codegen_flags: <defaults>
</compile_context>

<pallas_src>
import math

import jax
import jax.numpy as jnp
from jax.experimental import pallas as pl
from jax.experimental.pallas import tpu as pltpu

_MIB = 1024 * 1024


# ----------------------------------------------------------------------------- pe table (buffer)

def make_pe_table(max_len, d_model, dtype=jnp.float32):
    """Matches the PyTorch register_buffer: interleaved sin/cos table of shape (max_len, d_model)."""
    assert d_model % 2 == 0, "d_model must be even (same constraint as the PyTorch module)"
    position = jnp.arange(max_len, dtype=jnp.float32)[:, None]                       # (L, 1)
    div_term = jnp.exp(jnp.arange(0, d_model, 2, dtype=jnp.float32)
                       * (-math.log(10000.0) / d_model))                             # (D/2,)
    ang = position * div_term                                                        # (L, D/2)
    pe = jnp.stack([jnp.sin(ang), jnp.cos(ang)], axis=-1).reshape(max_len, d_model)  # interleave
    return pe.astype(dtype)


# ----------------------------------------------------------------------------- kernels

def _add_2d_kernel(x_ref, pe_ref, o_ref):
    # x/o: (bs, D) slab of one batch element; pe: (bs, D), resident in VMEM across batch steps.
    o_ref[...] = x_ref[...] + pe_ref[...]


def _add_seq_first_kernel(x_ref, pe_ref, o_ref):
    # x/o: (bs, B, D) fully contiguous slab; pe: (bs, 1, D) -> implicit broadcast over batch.
    o_ref[...] = x_ref[...] + pe_ref[...]


# ----------------------------------------------------------------------------- tiling helpers

def _vmem_block_budget_bytes():
    """Generation-aware budget for the double-buffered block working set."""
    cap = 64 * _MIB                      # conservative default = v7x physical VMEM per TC
    try:
        cap = int(getattr(pltpu.get_tpu_info(), "vmem_capacity_bytes", cap))
    except Exception:
        pass
    # Half of physical minus headroom for compiler-internal scratch:
    #   v7x (64 MiB) -> 28 MiB,   v5e/v6e (128 MiB) -> 60 MiB.
    return max(8 * _MIB, cap // 2 - 4 * _MIB)


def _choose_seq_block(seq, bytes_per_row, sublane, budget):
    """Largest seq tile (multiple of `sublane`, or the full S) whose buffered blocks fit `budget`."""
    bs = min(seq, budget // max(bytes_per_row, 1))
    if bs >= seq:
        return seq
    return max(sublane, (bs // sublane) * sublane)


def _maybe_split_for_megacore(seq, bs, sublane, block_bytes, grid_steps):
    """If a large problem collapsed to one grid step, split the seq axis in two so v7x's second
    TensorCore gets work (the extra ~0.35 us step is negligible above a few MiB per block)."""
    if grid_steps > 1 or block_bytes < 4 * _MIB or seq < 2 * sublane:
        return bs
    half = -(-seq // 2)
    return max(sublane, -(-half // sublane) * sublane)


# ----------------------------------------------------------------------------- wrapper

def positional_encoding_forward(x, pe, *, batch_first=True):
    """Eval-mode forward: x + pe[:S] broadcast over batch.

    x: (B, S, D) if batch_first else (S, B, D).  pe: (max_len, D).
    """
    if batch_first:
        B, S, D = x.shape
    else:
        S, B, D = x.shape
    assert pe.shape[0] >= S and pe.shape[1] == D
    # D not a multiple of 128 lanes still lowers correctly (masked vst) but loses store bandwidth;
    # keep d_model a multiple of 128 for full-lane stores.

    dtype = x.dtype
    itemsize = jnp.dtype(dtype).itemsize
    pe_s = pe[:S].astype(dtype)                      # static slice + explicit dtype match
    sublane = max(8, 32 // itemsize)                 # 8 f32 / 16 bf16 / 32 int8-fp8
    budget = _vmem_block_budget_bytes()

    cost = pl.CostEstimate(
        flops=B * S * D,
        transcendentals=0,
        bytes_accessed=(2 * B * S * D + S * D) * itemsize,
    )

    if batch_first:
        # Grid = (seq tiles, batch). Each step handles a lane-dense (bs, D) slab of one batch
        # element; pe's block index ignores the batch grid index, so the pe tile is fetched once
        # per seq tile and stays resident in VMEM across the B inner steps.
        per_row = 3 * 2 * D * itemsize               # x + out + pe blocks, double-buffered
        bs = _choose_seq_block(S, per_row, sublane, budget)
        bs = _maybe_split_for_megacore(S, bs, sublane, bs * D * itemsize,
                                       pl.cdiv(S, bs) * B)
        grid = (pl.cdiv(S, bs), B)
        kernel = _add_2d_kernel
        x_spec = pl.BlockSpec((None, bs, D), lambda i, b: (b, i, 0))
        o_spec = pl.BlockSpec((None, bs, D), lambda i, b: (b, i, 0))
        pe_spec = pl.BlockSpec((bs, D), lambda i, b: (i, 0))
        pe_arg = pe_s
        semantics = ("parallel", "parallel")
    else:
        # Grid = (seq tiles,). Blocks are fully contiguous (bs, B, D) slabs; pe is fed as
        # (S, 1, D) so the batch broadcast is an implicit broadcast hidden under the DMA.
        per_row = (2 * B + 1) * 2 * D * itemsize     # (x + out) * B rows + pe, double-buffered
        bs = _choose_seq_block(S, per_row, sublane, budget)
        bs = _maybe_split_for_megacore(S, bs, sublane, bs * B * D * itemsize,
                                       pl.cdiv(S, bs))
        grid = (pl.cdiv(S, bs),)
        kernel = _add_seq_first_kernel
        x_spec = pl.BlockSpec((bs, B, D), lambda i: (i, 0, 0))
        o_spec = pl.BlockSpec((bs, B, D), lambda i: (i, 0, 0))
        pe_spec = pl.BlockSpec((bs, 1, D), lambda i: (i, 0, 0))
        pe_arg = pe_s.reshape(S, 1, D)
        semantics = ("parallel",)

    return pl.pallas_call(
        kernel,
        out_shape=jax.ShapeDtypeStruct(x.shape, dtype),
        grid=grid,
        in_specs=[x_spec, pe_spec],
        out_specs=o_spec,
        input_output_aliases={0: 0},   # out may reuse x's HBM buffer (free when x is donated)
        compiler_params=pltpu.CompilerParams(
            dimension_semantics=semantics,
            vmem_limit_bytes=budget + 8 * _MIB,
        ),
        cost_estimate=cost,
    )(x, pe_arg)


# ----------------------------------------------------------------------------- main

if __name__ == "__main__":
    B, S, D = 2, 16, 128          # d_model = 128 keeps every store full-lane (unmasked vst)
    MAX_LEN = 5000

    key = jax.random.PRNGKey(0)
    x = jax.random.normal(key, (B, S, D), jnp.float32)
    pe = make_pe_table(MAX_LEN, D)

    # batch_first=True path (module default): x is (B, S, D)
    ref = x + pe[:S][None, :, :]
    y = jax.block_until_ready(positional_encoding_forward(x, pe, batch_first=True))
    assert y.shape == x.shape
    assert bool(jnp.isfinite(y).all())
    assert bool(jnp.allclose(y, ref, atol=1e-6, rtol=1e-6))

    # batch_first=False path: x is (S, B, D), pe broadcasts over the middle (batch) axis
    x_sf = jnp.transpose(x, (1, 0, 2))
    ref_sf = x_sf + pe[:S][:, None, :]
    y_sf = jax.block_until_ready(positional_encoding_forward(x_sf, pe, batch_first=False))
    assert y_sf.shape == x_sf.shape
    assert bool(jnp.allclose(y_sf, ref_sf, atol=1e-6, rtol=1e-6))

    print("KERNEL_OK")
</pallas_src>

<mosaic_0001>
module attributes {stable_mosaic.version = 11 : i64} {
  func.func @_add_2d_kernel(%arg0: i32, %arg1: i32, %arg2: memref<1x16x128xf32, #tpu.memory_space<vmem>>, %arg3: memref<16x128xf32, #tpu.memory_space<vmem>>, %arg4: memref<1x16x128xf32, #tpu.memory_space<vmem>>) attributes {dimension_semantics = [#tpu.dimension_semantics<parallel>, #tpu.dimension_semantics<parallel>], iteration_bounds = array<i64: 1, 2>, scalar_prefetch = 0 : i64, scratch_operands = 0 : i64, tpu.core_type = #tpu.core_type<tc>, window_params = [{transform_indices = @transform_0, window_bounds = array<i64: 1, 16, 128>}, {transform_indices = @transform_1, window_bounds = array<i64: 16, 128>}, {transform_indices = @transform_2, window_bounds = array<i64: 1, 16, 128>}]} {
    %c0 = arith.constant 0 : index
    %c0_0 = arith.constant 0 : index
    %c0_1 = arith.constant 0 : index
    %0 = vector.load %arg2[%c0, %c0_0, %c0_1] : memref<1x16x128xf32, #tpu.memory_space<vmem>>, vector<1x16x128xf32>
    %1 = vector.shape_cast %0 : vector<1x16x128xf32> to vector<16x128xf32>
    %c0_2 = arith.constant 0 : index
    %c0_3 = arith.constant 0 : index
    %2 = vector.load %arg3[%c0_2, %c0_3] : memref<16x128xf32, #tpu.memory_space<vmem>>, vector<16x128xf32>
    %3 = arith.addf %1, %2 : vector<16x128xf32>
    %c0_4 = arith.constant 0 : index
    %c0_5 = arith.constant 0 : index
    %c0_6 = arith.constant 0 : index
    %4 = vector.load %arg4[%c0_4, %c0_5, %c0_6] : memref<1x16x128xf32, #tpu.memory_space<vmem>>, vector<1x16x128xf32>
    %5 = vector.shape_cast %4 : vector<1x16x128xf32> to vector<16x128xf32>
    %6 = vector.shape_cast %3 : vector<16x128xf32> to vector<1x16x128xf32>
    tpu.vector_store %arg4[%c0_4, %c0_5, %c0_6], %6 {strides = array<i32>} : memref<1x16x128xf32, #tpu.memory_space<vmem>>, vector<1x16x128xf32>,
    return
  }
  func.func @transform_0(%arg0: i32, %arg1: i32) -> (i32, i32, i32) {
    %c0_i32 = arith.constant 0 : i32
    %c0_i32_0 = arith.constant 0 : i32
    return %arg1, %arg0, %c0_i32 : i32, i32, i32
  }
  func.func @transform_1(%arg0: i32, %arg1: i32) -> (i32, i32) {
    %c0_i32 = arith.constant 0 : i32
    %c0_i32_0 = arith.constant 0 : i32
    return %arg0, %c0_i32 : i32, i32
  }
  func.func @transform_2(%arg0: i32, %arg1: i32) -> (i32, i32, i32) {
    %c0_i32 = arith.constant 0 : i32
    %c0_i32_0 = arith.constant 0 : i32
    return %arg1, %arg0, %c0_i32 : i32, i32, i32
  }
}

</mosaic_0001>

<bundles_post_ra>
// kernel: tpu_custom_call.1
= control target key start
LH: loop header
LB: loop body
LE: loop exit
PB: predicated region body
PF: predicated region fallthrough
CT: control target
= control target key end

     0   :  { %7 = vsyncpa [#allocation3], 0  ;;  %s677_s0 = inlined_call_operand.hbm [shape: f32[2,16,128], index: 0, kind: input, shape index: {}, may-alias: {0,2}]   ;;  %s678_s1 = inlined_call_operand.vmem [shape: f32[16,128], index: 1, kind: input, shape index: {}]   ;;  %s679_s2 = inlined_call_operand.hbm [shape: f32[2,16,128], index: 2, kind: output, shape index: {}, may-alias: {0,2}]  }
   0x1   :  { %9 = vsyncpa [#allocation3 + $0x1], 0 }
   0x2   :  { %10 = vsyncpa [#allocation4], 0 }
   0x3   :  { %12 = vsyncpa [#allocation4 + $0x1], 0  ;;  %s551_s9 = smov 0   ;;  %s553_s10 = smov 0  }
   0x4   :  { %s555_s11 = smov 0   ;;  %s557_s12 = smov 0  }
   0x5   :  { %s559_s13 = smov 0   ;;  %s561_s14 = smov 0  }
   0x6 LB: > { %s334_s15 = sadd.s32 4294967295, %s530_s14   ;;  %s335_s16 = sadd.s32 4294967294, %s530_s14   ;;  %s530_s14 = sphi %s561_s14, %s18_s14   ;;  %s526_s13 = sphi %s559_s13, %s688_s13   ;;  %s522_s12 = sphi %s557_s12, %s687_s12   ;;  %s518_s11 = sphi %s555_s11, %s686_s11   ;;  %s514_s10 = sphi %s553_s10, %s685_s10   ;;  %s510_s9 = sphi %s551_s9, %s684_s9  }
   0x7   : > { %s27_s17 = sadd.s32 1, %s526_s13  ;;  %s39_s18 = sadd.s32 1, %s518_s11 }
   0x8   : > { %p28_p0 = scmp.ge.s32.totalorder %s27_s17, 2  ;;  %p46_p1 = scmp.ne.s32.totalorder %s518_s11, %s514_s10 }
   0x9   : > { %p47_p2 = scmp.eq.s32.totalorder %s530_s14, 0  ;;  %p52_p3 = scmp.ne.s32.totalorder %s514_s10, %s510_s9 }
   0xa   : > { %s690_s17 = smov (%p28_p0, %s27_s17), 0  ;;  %p53_p5 = scmp.eq.s32.totalorder %s334_s15, 0 }
   0xb   : > { %p592_p4 = por %p47_p2, %p46_p1  ;;  %s34_s20 = ssub.s32 %s526_s13, %s690_s17 }
   0xc   : > { %p104_p6 = scmp.eq.s32.totalorder %s334_s15, 1  ;;  %p37_p7 = scmp.eq.s32.totalorder %s34_s20, 0 }
   0xd   : > { %p598_p8 = por %p53_p5, %p52_p3  ;;  %p110_p10 = scmp.eq.s32.totalorder %s335_s16, 1 }
   0xe   : > { %p602_p9 = por %p104_p6, %p46_p1  ;;  %p338_p12 = scmp.ge.s32.totalorder %s530_s14, 2 }
   0xf   : > { %s607_s23 = scalar_select %p37_p7, %s518_s11, %s39_s18  }
  0x10   : > { %p609_p11 = por %p110_p10, %p52_p3  ;;  %p364_p13 = scmp.lt.s32.totalorder %s530_s14, 2 }
  0x11   : > { %s139_s25 = sand.u32 1, %s518_s11   ;;  %s350_s27 = sshll.u32 %s526_s13, 4 }
  0x12   : > { %s339_s26 = sshll.u32 %s139_s25, 4  ;;  %s150_s30 = scalar_lea.hbm %s677_s0, %s350_s27 }
  0x13   : > { %s143_s3 = scalar_lea.vmem [#allocation2], %s339_s26  ;;  %s151_s5 = sshll.u32 %s150_s30, 4  ;;  %s152_s5 = int_to_ptr.hbm [resolvable:$true] %s151_s5 }
  0x14   : > { %s153_s4 = sshll.u32 %s143_s3, 4  ;;  %p357_p0 = pnand %p364_p13, %p592_p4  ;;  %s154_s4 = int_to_ptr.vmem [resolvable:$true] %s153_s4 }
  0x15   : > { %p342_p1 = scmp.ge.s32.totalorder %s530_s14, 1  ;;  %s140_s6 = scalar_lea.sflag [#allocation3], %s139_s25 }
  0x16   : > { %s532_s7 = smov 128   ;;  %s533_s8 = smov 8  }
  0x17   : > { %359 = dma.hbm_to_vmem [thread:$0]  (!%p357_p0), %s152_s5, 256, %s154_s4, %s140_s6, %s532_s7, %s532_s7, %s533_s8  }
  0x18   : > { %p161_p2 = scmp.lt.s32.totalorder %s530_s14, 3 }
  0x1a   : > { %p162_p3 = pnand %p342_p1, %p161_p2 }
  0x1b   : > { %s625_s15 = sand.u32 (!%p162_p3), 1, %s514_s10  }
  0x1c   : > { %165 = sbr.rel (%p162_p3) target bundleno = 50 (0x32), region = 28  ;;  %s343_s16 = sshll.u32 (!%p162_p3), %s625_s15, 4 }
  0x1d   : > { %s168_s18 = scalar_lea.sflag (!%p162_p3), [#allocation3], %s625_s15  ;;  %s171_s20 = scalar_lea.vmem (!%p162_p3), [#allocation2], %s343_s16 }
  0x21   : > { %501 = dma.done.wait (%p598_p8), %s168_s18, 256  }
  0x22   : > { %503 = vsyncadd (%p598_p8), %s168_s18, 4294967040  ;;  %s351_s19 = sshll.u32 %s522_s12, 4  ;;  %s197_s28 = scalar_lea.vmem [#allocation5], %s343_s16  ;;  %v206_v0 = vld [vmem:[%s171_s20] sm:$0xff]  ;;  %v207_v2 = vld [vmem:[%s171_s20 + $0x8] sm:$0xff] }
  0x23   : > { %s228_s27 = scalar_lea.hbm %s679_s2, %s351_s19  ;;  %s229_s29 = sshll.u32 %s197_s28, 4  ;;  %v208_v1 = vld [vmem:[%s678_s1] sm:$0xff]  ;;  %v209_v4 = vld [vmem:[%s678_s1 + $0x8] sm:$0xff]  ;;  %s230_s29 = int_to_ptr.vmem [resolvable:$true] %s229_s29 }
  0x24   : > { %s231_s30 = sshll.u32 %s228_s27, 4  ;;  %v210_v3 = vadd.f32 %v208_v1, %v206_v0  ;;  %v211_v5 = vadd.f32 %v209_v4, %v207_v2  ;;  %s215_s12 = scalar_lea.sflag [#allocation4], %s625_s15  ;;  %s232_s30 = int_to_ptr.hbm [resolvable:$true] %s231_s30 }
  0x25   : > { %s462_s6 = sshra.s32 %s232_s30, 4  ;;  %s468_s18 = scalar_lea.hbm %s679_s2, 32  ;;  %s463_s6 = int_to_ptr.hbm [resolvable:$true] %s462_s6 }
  0x26   : > { %212 = vst [vmem:[%s197_s28] sm:$0xff] %v210_v3  ;;  %s464_s7 = scalar_lea.hbm %s463_s6, 16  ;;  %p469_p7 = scmp.lt.s32.totalorder %s463_s6, %s679_s2 }
  0x27   : > { %213 = vst [vmem:[%s197_s28 + $0x8] sm:$0xff] %v211_v5  ;;  %p465_p4 = scmp.ne.s32.totalorder %s463_s6, %s464_s7  ;;  %p470_p8 = scmp.lt.s32.totalorder %s468_s18, %s464_s7 }
  0x29   : > { %p466_p5 = pnand %p465_p4, %p602_p9  ;;  %p471_p10 = por %p470_p8, %p469_p7 }
  0x2b   : > { %p467_p6 = pneg %p466_p5 }
  0x2d   : > { %p472_p13 = pnand %p471_p10, %p467_p6 }
  0x2f   : > { %475 = shalt.err (!%p472_p13)
}
  0x30   : > { %s534_s15 = smov 128   ;;  %s535_s25 = smov 8  }
  0x31   : > { %354 = dma.vmem_to_hbm [thread:$0]  (%p602_p9), %s230_s29, 256, %s232_s30, %s215_s12, %s534_s15, %s534_s15, %s535_s25  }
  0x32 PF: > { %s246_s26 = sand.u32 1, %s510_s9   ;;  %p361_p0 = pnand %p338_p12, %p609_p11 }
  0x33   : > { %s247_s27 = scalar_lea.sflag [#allocation4], %s246_s26 }
  0x34   : > { %p362_p1 = pneg %p361_p0 }
  0x36   : > { %505 = dma.done.wait (%p362_p1), %s247_s27, 256  }
  0x37   : > { %507 = vsyncadd (%p362_p1), %s247_s27, 4294967040  ;;  %s18_s14 = sadd.s32 1, %s530_s14   ;;  %s684_s9 = smov %s514_s10 }
  0x38   : > { %p15_p2 = scmp.ge.s32.totalorder %s18_s14, 4   ;;  %s685_s10 = smov %s518_s11 }
  0x39   : > { %s686_s11 = smov %s607_s23  ;;  %s687_s12 = smov %s526_s13 }
  0x3a   : > { %s688_s13 = smov %s690_s17  ;;  %17 = sbr.rel (!%p15_p2) target bundleno = 6 (0x6), region = 76 }
  0x3f   :  { %253 = vsyncpa [#allocation3], 1 }
  0x40   :  { %255 = vsyncpa [#allocation3 + $0x1], 1 }
  0x41   :  { %256 = vsyncpa [#allocation4], 1 }
  0x42   :  { %258 = vsyncpa [#allocation4 + $0x1], 1 }

</bundles_post_ra>
